<compile_context>
chip_gen: v7x
topology: tpu7x:2x2x1
jax: 0.10.0
libtpu: 0.0.40
codegen_flags: <defaults>
</compile_context>

<pallas_src>
import jax
import jax.numpy as jnp
from jax.experimental import pallas as pl
from jax.experimental.pallas import tpu as pltpu


def _round_up(x, m):
    return (x + m - 1) // m * m


def pinn_forward_kernel(c_ref,                      # SMEM (8,) f32 constants (scalar prefetch)
                        x_ref,                      # VMEM (2, TN): row0=x1, row1=x2
                        w0t_ref, b0t_ref,           # (H, 2), (H, 1)
                        w1t_ref, b1t_ref,           # (H, H), (H, 1)
                        w2_ref, b2_ref,             # (H, 1), (1, 1)
                        psi_ref):                   # out (1, TN)
    xv = x_ref[...]                                 # (2, TN)
    x1 = xv[0:1, :]                                 # (1, TN)
    x2 = xv[1:2, :]                                 # (1, TN)

    lb0, lb1 = c_ref[0], c_ref[1]
    ub0, ub1 = c_ref[2], c_ref[3]
    s0, s1 = c_ref[4], c_ref[5]                     # 2/(ub-lb)
    t0, t1 = c_ref[6], c_ref[7]                     # -2*lb/(ub-lb) - 1

    # coor_shift as a fused multiply-add (host precomputed affine constants)
    xs1 = x1 * s0 + t0                              # (1, TN)
    xs2 = x2 * s1 + t1                              # (1, TN)

    # layer 0: rank-1 expansion of [xs1 xs2] @ W0 in transposed layout (VPU)
    w0t = w0t_ref[...]                              # (H, 2)
    h = jnp.tanh(w0t[:, 0:1] * xs1 + w0t[:, 1:2] * xs2 + b0t_ref[...])     # (H, TN)

    # layer 1: (H,H) @ (H,TN) on the MXU, points stay on lanes
    h = jnp.tanh(jnp.dot(w1t_ref[...], h,
                         preferred_element_type=jnp.float32) + b1t_ref[...])  # (H, TN)

    # layer 2 (output width 1): VPU multiply + cross-sublane reduce (XLU).
    n_out = jnp.sum(w2_ref[...] * h, axis=0, keepdims=True) + b2_ref[...]  # (1, TN)

    # boundary-vanishing factor g and lift function g0 (lane-dense)
    g = (x1 - lb0) * (x1 - ub0) * (x2 - lb1) * (x2 - ub1)                  # (1, TN)
    g0 = x1 * x1 + x2 * x2       # TODO(synk): stand-in for train_dict['g0']

    psi_ref[...] = g * n_out + g0


def pinn_forward(x1, x2, params, lb, ub, *, tile_n=2048):
    """x1, x2: (N, 1) float32. Returns psi: (N, 1) float32."""
    (w0, b0), (w1, b1), (w2, b2) = params
    N = x1.shape[0]
    H = w0.shape[1]

    # Lane-dense tiling: points on lanes, tile a multiple of 128, single grid
    # step when N is small.
    tile_n = max(128, _round_up(min(tile_n, N), 128))
    n_pad = _round_up(N, tile_n)
    grid = (n_pad // tile_n,)

    # One fused (2, Npad) input stream; padded columns are stripped afterwards.
    x = jnp.concatenate([x1, x2], axis=1).T.astype(jnp.float32)   # (2, N)
    if n_pad != N:
        x = jnp.pad(x, ((0, 0), (0, n_pad - N)))

    # Host-precomputed coor_shift affine constants + bounds for g (SMEM).
    lb = lb.astype(jnp.float32)
    ub = ub.astype(jnp.float32)
    scale = 2.0 / (ub - lb)
    shift = -2.0 * lb / (ub - lb) - 1.0
    consts = jnp.concatenate([lb, ub, scale, shift]).astype(jnp.float32)  # (8,)

    # Transposed weights so activations are (H, TN) with points on lanes.
    w0t = w0.T.astype(jnp.float32)                  # (H, 2)
    b0t = b0.T.astype(jnp.float32)                  # (H, 1)
    w1t = w1.T.astype(jnp.float32)                  # (H, H)
    b1t = b1.T.astype(jnp.float32)                  # (H, 1)
    w2 = w2.astype(jnp.float32)                     # (H, 1)
    b2 = b2.astype(jnp.float32)                     # (1, 1)

    # index_maps receive the scalar-prefetch ref as a trailing positional arg.
    full = lambda a: pl.BlockSpec(a.shape, lambda i, c: (0, 0))

    weight_elems = 2 * H + H + H * H + H + H + 1
    cost = pl.CostEstimate(
        flops=int(2 * n_pad * (2 * H + H * H + H) + 16 * n_pad),
        transcendentals=int(2 * n_pad * H),
        bytes_accessed=int(4 * (3 * n_pad + weight_elems)),
    )

    psi_row = pl.pallas_call(
        pinn_forward_kernel,
        out_shape=jax.ShapeDtypeStruct((1, n_pad), jnp.float32),
        grid_spec=pltpu.PrefetchScalarGridSpec(
            num_scalar_prefetch=1,                              # consts -> SMEM
            grid=grid,
            in_specs=[
                pl.BlockSpec((2, tile_n), lambda i, c: (0, i)),  # x slab
                full(w0t), full(b0t),
                full(w1t), full(b1t),
                full(w2), full(b2),
            ],
            out_specs=pl.BlockSpec((1, tile_n), lambda i, c: (0, i)),
        ),
        compiler_params=pltpu.CompilerParams(
            dimension_semantics=("parallel",)),
        cost_estimate=cost,
    )(consts, x, w0t, b0t, w1t, b1t, w2, b2)

    return psi_row[:, :N].T       # back to (N, 1)


def xavier_normal(key, fan_in, fan_out):
    std = jnp.sqrt(2.0 / (fan_in + fan_out))
    return std * jax.random.normal(key, (fan_in, fan_out), dtype=jnp.float32)


def init_pinn_params(key, layers):
    """Mirrors PINN.initialize_NN: xavier_normal weights, zero biases."""
    params = []
    keys = jax.random.split(key, len(layers) - 1)
    for l in range(len(layers) - 1):
        w = xavier_normal(keys[l], layers[l], layers[l + 1])
        b = jnp.zeros((1, layers[l + 1]), dtype=jnp.float32)
        params.append((w, b))
    return params


def pinn_forward_ref(x1, x2, params, lb, ub):
    """Plain-JAX reference matching the PyTorch forward."""
    X = jnp.concatenate([x1, x2], axis=1)
    Xs = 2.0 * (X - lb[None, :]) / (ub[None, :] - lb[None, :]) - 1.0
    h = Xs
    for (w, b) in params[:-1]:
        h = jnp.tanh(h @ w + b)
    w, b = params[-1]
    n_out = h @ w + b
    g = (x1 - lb[0]) * (x1 - ub[0]) * (x2 - lb[1]) * (x2 - ub[1])
    g0 = x1 * x1 + x2 * x2
    return g * n_out + g0


if __name__ == "__main__":
    key = jax.random.PRNGKey(0)
    k_w, k_x1, k_x2 = jax.random.split(key, 3)

    # small PINN: layers = [2, 32, 32, 1], 256 collocation points
    layers = [2, 32, 32, 1]
    params = init_pinn_params(k_w, layers)

    lb = jnp.array([-1.0, -1.0], dtype=jnp.float32)
    ub = jnp.array([1.0, 1.0], dtype=jnp.float32)

    N = 256
    x1 = jax.random.uniform(k_x1, (N, 1), dtype=jnp.float32,
                            minval=lb[0], maxval=ub[0])
    x2 = jax.random.uniform(k_x2, (N, 1), dtype=jnp.float32,
                            minval=lb[1], maxval=ub[1])

    psi = pinn_forward(x1, x2, params, lb, ub)
    psi = jax.block_until_ready(psi)

    psi_ref = pinn_forward_ref(x1, x2, params, lb, ub)
    assert psi.shape == (N, 1) and psi.dtype == jnp.float32
    assert jnp.allclose(psi, psi_ref, rtol=1e-4, atol=1e-5), "mismatch vs reference"

    print("KERNEL_OK")
</pallas_src>

<mosaic_0001>
module attributes {stable_mosaic.version = 11 : i64} {
  func.func @pinn_forward_kernel(%arg0: i32, %arg1: memref<8xf32, #tpu.memory_space<smem>>, %arg2: memref<2x256xf32, #tpu.memory_space<vmem>>, %arg3: memref<32x2xf32, #tpu.memory_space<vmem>>, %arg4: memref<32x1xf32, #tpu.memory_space<vmem>>, %arg5: memref<32x32xf32, #tpu.memory_space<vmem>>, %arg6: memref<32x1xf32, #tpu.memory_space<vmem>>, %arg7: memref<32x1xf32, #tpu.memory_space<vmem>>, %arg8: memref<1x1xf32, #tpu.memory_space<vmem>>, %arg9: memref<1x256xf32, #tpu.memory_space<vmem>>) attributes {dimension_semantics = [#tpu.dimension_semantics<parallel>], iteration_bounds = array<i64: 1>, scalar_prefetch = 1 : i64, scratch_operands = 0 : i64, tpu.core_type = #tpu.core_type<tc>, window_params = [{transform_indices = @transform_0, window_bounds = array<i64: 2, 256>}, {pipeline_mode = #tpu.pipeline_mode<synchronous>, transform_indices = @transform_1, window_bounds = array<i64: 32, 2>}, {pipeline_mode = #tpu.pipeline_mode<synchronous>, transform_indices = @transform_2, window_bounds = array<i64: 32, 1>}, {pipeline_mode = #tpu.pipeline_mode<synchronous>, transform_indices = @transform_3, window_bounds = array<i64: 32, 32>}, {pipeline_mode = #tpu.pipeline_mode<synchronous>, transform_indices = @transform_4, window_bounds = array<i64: 32, 1>}, {pipeline_mode = #tpu.pipeline_mode<synchronous>, transform_indices = @transform_5, window_bounds = array<i64: 32, 1>}, {pipeline_mode = #tpu.pipeline_mode<synchronous>, transform_indices = @transform_6, window_bounds = array<i64: 1, 1>}, {transform_indices = @transform_7, window_bounds = array<i64: 1, 256>}]} {
    %c0 = arith.constant 0 : index
    %c0_0 = arith.constant 0 : index
    %0 = vector.load %arg2[%c0, %c0_0] : memref<2x256xf32, #tpu.memory_space<vmem>>, vector<2x256xf32>
    %1 = vector.extract_strided_slice %0 {offsets = [0, 0], sizes = [1, 256], strides = [1, 1]} : vector<2x256xf32> to vector<1x256xf32>
    %2 = vector.extract_strided_slice %0 {offsets = [1, 0], sizes = [1, 256], strides = [1, 1]} : vector<2x256xf32> to vector<1x256xf32>
    %c0_1 = arith.constant 0 : index
    %3 = memref.load %arg1[%c0_1] : memref<8xf32, #tpu.memory_space<smem>>
    %c1 = arith.constant 1 : index
    %4 = memref.load %arg1[%c1] : memref<8xf32, #tpu.memory_space<smem>>
    %c2 = arith.constant 2 : index
    %5 = memref.load %arg1[%c2] : memref<8xf32, #tpu.memory_space<smem>>
    %c3 = arith.constant 3 : index
    %6 = memref.load %arg1[%c3] : memref<8xf32, #tpu.memory_space<smem>>
    %c4 = arith.constant 4 : index
    %7 = memref.load %arg1[%c4] : memref<8xf32, #tpu.memory_space<smem>>
    %c5 = arith.constant 5 : index
    %8 = memref.load %arg1[%c5] : memref<8xf32, #tpu.memory_space<smem>>
    %c6 = arith.constant 6 : index
    %9 = memref.load %arg1[%c6] : memref<8xf32, #tpu.memory_space<smem>>
    %c7 = arith.constant 7 : index
    %10 = memref.load %arg1[%c7] : memref<8xf32, #tpu.memory_space<smem>>
    %11 = vector.broadcast %7 : f32 to vector<1x256xf32>
    %12 = arith.mulf %1, %11 : vector<1x256xf32>
    %13 = vector.broadcast %9 : f32 to vector<1x256xf32>
    %14 = arith.addf %12, %13 : vector<1x256xf32>
    %15 = vector.broadcast %8 : f32 to vector<1x256xf32>
    %16 = arith.mulf %2, %15 : vector<1x256xf32>
    %17 = vector.broadcast %10 : f32 to vector<1x256xf32>
    %18 = arith.addf %16, %17 : vector<1x256xf32>
    %c0_2 = arith.constant 0 : index
    %c0_3 = arith.constant 0 : index
    %19 = vector.load %arg3[%c0_2, %c0_3] : memref<32x2xf32, #tpu.memory_space<vmem>>, vector<32x2xf32>
    %20 = vector.extract_strided_slice %19 {offsets = [0, 0], sizes = [32, 1], strides = [1, 1]} : vector<32x2xf32> to vector<32x1xf32>
    %21 = vector.broadcast %20 : vector<32x1xf32> to vector<32x256xf32>
    %22 = vector.broadcast %14 : vector<1x256xf32> to vector<32x256xf32>
    %23 = arith.mulf %21, %22 : vector<32x256xf32>
    %24 = vector.extract_strided_slice %19 {offsets = [0, 1], sizes = [32, 1], strides = [1, 1]} : vector<32x2xf32> to vector<32x1xf32>
    %25 = vector.broadcast %24 : vector<32x1xf32> to vector<32x256xf32>
    %26 = vector.broadcast %18 : vector<1x256xf32> to vector<32x256xf32>
    %27 = arith.mulf %25, %26 : vector<32x256xf32>
    %28 = arith.addf %23, %27 : vector<32x256xf32>
    %c0_4 = arith.constant 0 : index
    %c0_5 = arith.constant 0 : index
    %29 = vector.load %arg4[%c0_4, %c0_5] : memref<32x1xf32, #tpu.memory_space<vmem>>, vector<32x1xf32>
    %30 = vector.broadcast %29 : vector<32x1xf32> to vector<32x256xf32>
    %31 = arith.addf %28, %30 : vector<32x256xf32>
    %32 = math.tanh %31 : vector<32x256xf32>
    %c0_6 = arith.constant 0 : index
    %c0_7 = arith.constant 0 : index
    %33 = vector.load %arg5[%c0_6, %c0_7] : memref<32x32xf32, #tpu.memory_space<vmem>>, vector<32x32xf32>
    %cst = arith.constant dense<0.000000e+00> : vector<32x256xf32>
    %34 = tpu.matmul %33, %32, %cst {dimension_numbers = #tpu.dot_dimension_numbers<[1], [0], [0], [1], [0, 0, 1, 1], [], []>} : vector<32x32xf32>, vector<32x256xf32>, vector<32x256xf32> -> vector<32x256xf32>
    %c0_8 = arith.constant 0 : index
    %c0_9 = arith.constant 0 : index
    %35 = vector.load %arg6[%c0_8, %c0_9] : memref<32x1xf32, #tpu.memory_space<vmem>>, vector<32x1xf32>
    %36 = vector.broadcast %35 : vector<32x1xf32> to vector<32x256xf32>
    %37 = arith.addf %34, %36 : vector<32x256xf32>
    %38 = math.tanh %37 : vector<32x256xf32>
    %c0_10 = arith.constant 0 : index
    %c0_11 = arith.constant 0 : index
    %39 = vector.load %arg7[%c0_10, %c0_11] : memref<32x1xf32, #tpu.memory_space<vmem>>, vector<32x1xf32>
    %40 = vector.broadcast %39 : vector<32x1xf32> to vector<32x256xf32>
    %41 = arith.mulf %40, %38 : vector<32x256xf32>
    %cst_12 = arith.constant dense<0.000000e+00> : vector<256xf32>
    %42 = vector.multi_reduction <add>, %41, %cst_12 [0] : vector<32x256xf32> to vector<256xf32>
    %43 = vector.shape_cast %42 : vector<256xf32> to vector<1x256xf32>
    %c0_13 = arith.constant 0 : index
    %c0_14 = arith.constant 0 : index
    %44 = vector.load %arg8[%c0_13, %c0_14] : memref<1x1xf32, #tpu.memory_space<vmem>>, vector<1x1xf32>
    %45 = vector.broadcast %44 : vector<1x1xf32> to vector<1x256xf32>
    %46 = arith.addf %43, %45 : vector<1x256xf32>
    %47 = vector.broadcast %3 : f32 to vector<1x256xf32>
    %48 = arith.subf %1, %47 : vector<1x256xf32>
    %49 = vector.broadcast %5 : f32 to vector<1x256xf32>
    %50 = arith.subf %1, %49 : vector<1x256xf32>
    %51 = arith.mulf %48, %50 : vector<1x256xf32>
    %52 = vector.broadcast %4 : f32 to vector<1x256xf32>
    %53 = arith.subf %2, %52 : vector<1x256xf32>
    %54 = arith.mulf %51, %53 : vector<1x256xf32>
    %55 = vector.broadcast %6 : f32 to vector<1x256xf32>
    %56 = arith.subf %2, %55 : vector<1x256xf32>
    %57 = arith.mulf %54, %56 : vector<1x256xf32>
    %58 = arith.mulf %1, %1 : vector<1x256xf32>
    %59 = arith.mulf %2, %2 : vector<1x256xf32>
    %60 = arith.addf %58, %59 : vector<1x256xf32>
    %61 = arith.mulf %57, %46 : vector<1x256xf32>
    %62 = arith.addf %61, %60 : vector<1x256xf32>
    %c0_15 = arith.constant 0 : index
    %c0_16 = arith.constant 0 : index
    %63 = vector.load %arg9[%c0_15, %c0_16] : memref<1x256xf32, #tpu.memory_space<vmem>>, vector<1x256xf32>
    tpu.vector_store %arg9[%c0_15, %c0_16], %62 {strides = array<i32>} : memref<1x256xf32, #tpu.memory_space<vmem>>, vector<1x256xf32>,
    return
  }
  func.func @transform_0(%arg0: i32, %arg1: memref<8xf32, #tpu.memory_space<smem>>) -> (i32, i32) {
    %c0_i32 = arith.constant 0 : i32
    %c0_i32_0 = arith.constant 0 : i32
    return %c0_i32, %arg0 : i32, i32
  }
  func.func @transform_1(%arg0: i32, %arg1: memref<8xf32, #tpu.memory_space<smem>>) -> (i32, i32) {
    %c0_i32 = arith.constant 0 : i32
    %c0_i32_0 = arith.constant 0 : i32
    %c0_i32_1 = arith.constant 0 : i32
    return %c0_i32, %c0_i32_0 : i32, i32
  }
  func.func @transform_2(%arg0: i32, %arg1: memref<8xf32, #tpu.memory_space<smem>>) -> (i32, i32) {
    %c0_i32 = arith.constant 0 : i32
    %c0_i32_0 = arith.constant 0 : i32
    %c0_i32_1 = arith.constant 0 : i32
    return %c0_i32, %c0_i32_0 : i32, i32
  }
  func.func @transform_3(%arg0: i32, %arg1: memref<8xf32, #tpu.memory_space<smem>>) -> (i32, i32) {
    %c0_i32 = arith.constant 0 : i32
    %c0_i32_0 = arith.constant 0 : i32
    %c0_i32_1 = arith.constant 0 : i32
    return %c0_i32, %c0_i32_0 : i32, i32
  }
  func.func @transform_4(%arg0: i32, %arg1: memref<8xf32, #tpu.memory_space<smem>>) -> (i32, i32) {
    %c0_i32 = arith.constant 0 : i32
    %c0_i32_0 = arith.constant 0 : i32
    %c0_i32_1 = arith.constant 0 : i32
    return %c0_i32, %c0_i32_0 : i32, i32
  }
  func.func @transform_5(%arg0: i32, %arg1: memref<8xf32, #tpu.memory_space<smem>>) -> (i32, i32) {
    %c0_i32 = arith.constant 0 : i32
    %c0_i32_0 = arith.constant 0 : i32
    %c0_i32_1 = arith.constant 0 : i32
    return %c0_i32, %c0_i32_0 : i32, i32
  }
  func.func @transform_6(%arg0: i32, %arg1: memref<8xf32, #tpu.memory_space<smem>>) -> (i32, i32) {
    %c0_i32 = arith.constant 0 : i32
    %c0_i32_0 = arith.constant 0 : i32
    %c0_i32_1 = arith.constant 0 : i32
    return %c0_i32, %c0_i32_0 : i32, i32
  }
  func.func @transform_7(%arg0: i32, %arg1: memref<8xf32, #tpu.memory_space<smem>>) -> (i32, i32) {
    %c0_i32 = arith.constant 0 : i32
    %c0_i32_0 = arith.constant 0 : i32
    return %c0_i32, %arg0 : i32, i32
  }
}

</mosaic_0001>

<bundles_post_ra>
// kernel: tpu_custom_call.1
= control target key start
LH: loop header
LB: loop body
LE: loop exit
PB: predicated region body
PF: predicated region fallthrough
CT: control target
= control target key end

     0   :  { %s733_s0 = inlined_call_operand.vmem [shape: f32[8], index: 0, kind: input, shape index: {}]   ;;  %s734_s1 = inlined_call_operand.vmem [shape: f32[2,256], index: 1, kind: input, shape index: {}]   ;;  %s735_s2 = inlined_call_operand.vmem [shape: f32[32,2], index: 2, kind: input, shape index: {}]   ;;  %s736_s3 = inlined_call_operand.vmem [shape: f32[32,1], index: 3, kind: input, shape index: {}]   ;;  %s737_s4 = inlined_call_operand.vmem [shape: f32[32,32], index: 4, kind: input, shape index: {}]   ;;  %s738_s5 = inlined_call_operand.vmem [shape: f32[32,1], index: 5, kind: input, shape index: {}]   ;;  %s739_s6 = inlined_call_operand.vmem [shape: f32[32,1], index: 6, kind: input, shape index: {}]   ;;  %s740_s8 = inlined_call_operand.hbm [shape: f32[1,256], index: 8, kind: output, shape index: {}]   ;;  %s741_s7 = inlined_call_operand.<no memory space> [shape: f32[1,1], index: 7, kind: input, shape index: {}]  }
   0x1   :  { %s13_s29 = sshll.u32 %s733_s0, 4  ;;  %v17_v0 = vstv %s741_s7  ;;  %s14_s29 = int_to_ptr.vmem [resolvable:$true] %s13_s29 }
   0x2   :  { %18 = vst [vmem:[#allocation4] sm:$0x1] %v17_v0  ;;  %s532_s10 = scalar_lea.vmem %s14_s29, 16  ;;  %p537_p1 = scmp.lt.s32.totalorder %s14_s29, %s14_s29 }
   0x3   :  { %p533_p0 = scmp.ne.s32.totalorder %s14_s29, %s532_s10  ;;  %p538_p2 = scmp.lt.s32.totalorder %s532_s10, %s532_s10 }
   0x5   :  { %p539_p3 = por %p538_p2, %p537_p1 }
   0x7   :  { %p540_p4 = pnand %p539_p3, %p533_p0 }
   0x9   :  { %543 = shalt.err (!%p540_p4)  }
   0xa   :  { %s570_s11 = smov [#allocation3]  }
   0xb   :  { %16 = dma.vmem_to_smem %s14_s29, 16, %s570_s11, [#allocation2] }
   0xc   :  { %566 = dma.done.wait [#allocation2], 16 }
   0xd   :  { %567 = vsyncadd [#allocation2], 4294967280 }
   0xe   :  { %20 = sfence }
   0xf   :  { %v55_v1 = vld [vmem:[%s735_s2 + $0x10] sm:$0xff]  ;;  %v53_v2 = vld [vmem:[%s735_s2] sm:$0xff]  ;;  %v571_v3 = vmov 1   ;;  %v54_v4 = vld [vmem:[%s735_s2 + $0x8] sm:$0xff]  ;;  %v572_v5 = vmov 0  }
  0x10   :  { %496 = vset.pattern.permute.xlu0 %v571_v3  ;;  %494 = vset.pattern.permute.xlu1 %v571_v3 }
  0x11   :  { %113 = vperm.xlu0 %496, %v55_v1   ;;  %105 = vperm.xlu1 %494, %v53_v2  }
  0x15   :  { %497 = vset.pattern.permute.xlu0 %v572_v5  ;;  %109 = vperm.xlu1 %494, %v54_v4  }
  0x16   :  { %21 = vsyncpa [#allocation6], 0  ;;  %59 = vperm.xlu0 %497, %v53_v2   ;;  %v56_v6 = vld [vmem:[%s735_s2 + $0x18] sm:$0xff]  ;;  %v156_v7 = vld [vmem:[%s736_s3 + $0x8] sm:$0xff]  ;;  %v573_v20 = vmov 0.0   ;;  %s465_s16 = sld [smem:[#allocation3 + $0x5]]  ;;  %v78_v22 = vlaneseq }
  0x17   :  { %v155_v8 = vld [vmem:[%s736_s3] sm:$0xff]  ;;  %v157_v10 = vld [vmem:[%s736_s3 + $0x10] sm:$0xff]  ;;  %v158_v12 = vld [vmem:[%s736_s3 + $0x18] sm:$0xff]  ;;  %300 = vmatprep.mubr.f32.mxu0 %v573_v20  ;;  %312 = vmatprep.mubr.f32.mxu1 %v573_v20  ;;  %s466_s17 = sld [smem:[#allocation3 + $0x6]]  ;;  %s467_s18 = sld [smem:[#allocation3 + $0x7]]  ;;  %vm223_vm0 = vcmask 261120  }
  0x18   :  { %v199_v9 = vld [vmem:[%s738_s5] sm:$0xff]  ;;  %v201_v11 = vld [vmem:[%s738_s5 + $0x10] sm:$0xff]  ;;  %v200_v14 = vld [vmem:[%s738_s5 + $0x8] sm:$0xff]  ;;  %v685_v27 = vshrl.u32 %v78_v22, 7  ;;  %s461_s26 = sld [smem:[#allocation3 + $0x1]]  ;;  %s462_s27 = sld [smem:[#allocation3 + $0x2]] }
  0x19   :  { %495 = vset.pattern.permute.xlu1 %v572_v5  ;;  %v333_v13 = vld [vmem:[%s739_s6] sm:$0xff]  ;;  %v335_v15 = vld [vmem:[%s739_s6 + $0x10] sm:$0xff]  ;;  %v202_v16 = vld [vmem:[%s738_s5 + $0x18] sm:$0xff]  ;;  %s464_s5 = sld [smem:[#allocation3 + $0x4]]  ;;  %s463_s28 = sld [smem:[#allocation3 + $0x3]]  ;;  %vm444_vm1 = vcmp.lt.s32.totalorder %v78_v22, 256 }
  0x1a   :  { %64 = vperm.xlu0 %497, %v54_v4   ;;  %74 = vperm.xlu1 %495, %v56_v6   ;;  %v383_v17 = vld [vmem:[#allocation4] sm:$0x1]  ;;  %v334_v18 = vld [vmem:[%s739_s6 + $0x8] sm:$0xff]  ;;  %v336_v19 = vld [vmem:[%s739_s6 + $0x18] sm:$0xff]  ;;  %v689_v32 = vsub.s32 0, %v685_v27  ;;  %v84_v34 = vsub.s32 2, %v685_v27 }
  0x1b   :  { %v681_v23 = vld [vmem:[%s734_s1] sm:$0xf]  ;;  %v123_v35 = vsub.s32 1, %v685_v27  ;;  %v127_v37 = vsub.s32 3, %v685_v27  ;;  %s576_s29 = smov [#allocation5]  }
  0x1c   :  { %v49_v24 = vstv %s465_s16  ;;  %s453_s30 = sshll.u32 %s576_s29, 4  ;;  %s454_s30 = int_to_ptr.vmem [resolvable:$true] %s453_s30 }
  0x1d   :  { %v47_v26 = vstv %s466_s17  ;;  %v50_v28 = vmul.f32 %v49_v24, %v681_v23  ;;  %v51_v30 = vstv %s467_s18  ;;  %s544_s9 = scalar_lea.vmem %s454_s30, 32  ;;  %p549_p6 = scmp.lt.s32.totalorder %s454_s30, %s454_s30 }
  0x1e   :  { %69 = vperm.xlu0 %497, %v55_v1   ;;  %498 = vset.pattern.permute.xlu1 %v571_v3  ;;  %p545_p5 = scmp.ne.s32.totalorder %s454_s30, %s544_s9  ;;  %p550_p7 = scmp.lt.s32.totalorder %s544_s9, %s544_s9 }
  0x1f   :  { %117 = vperm.xlu1 %498, %v56_v6   ;;  %v45_v21 = vstv %s464_s5  ;;  %v52_v36 = vadd.f32 %v51_v30, %v50_v28 }
  0x20   :  { %v46_v25 = vmul.f32 %v45_v21, %v681_v23  ;;  %p551_p8 = por %p550_p7, %p549_p6 }
  0x21   :  { %v124_v42 = vrot.slane %v52_v36, %v123_v35  ;;  %v128_v43 = vrot.slane %v52_v36, %v127_v37 }
  0x22   :  { %166 = vperm.xlu0 %497, %v156_v7   ;;  %v48_v33 = vadd.f32 %v47_v26, %v46_v25  ;;  %p552_p9 = pnand %p551_p8, %p545_p5 }
  0x23   :  { %499 = vset.pattern.permute.xlu1 %v572_v5  ;;  %v134_v48 = vrot.slane %v124_v42, %v123_v35  ;;  %v138_v49 = vrot.slane %v128_v43, %v123_v35  ;;  %v197_v42 = vld [vmem:[%s737_s4 + $0x10] sm:$0xff]  ;;  %v196_v43 = vld [vmem:[%s737_s4 + $0x8] sm:$0xff] }
  0x24   :  { %161 = vperm.xlu1 %499, %v155_v8   ;;  %v81_v40 = vrot.slane %v48_v33, %v689_v32  ;;  %v85_v41 = vrot.slane %v48_v33, %v84_v34 }
  0x26   :  { %205 = vperm.xlu0 %497, %v199_v9   ;;  %v91_v44 = vrot.slane %v81_v40, %v689_v32  ;;  %v95_v47 = vrot.slane %v85_v41, %v689_v32  ;;  %v195_v41 = vld [vmem:[%s737_s4] sm:$0xff] }
  0x28   :  { %171 = vperm.xlu1 %499, %v157_v10  }
  0x2a   :  { %215 = vperm.xlu0 %497, %v201_v11  }
  0x2c   :  { %176 = vperm.xlu1 %499, %v158_v12  }
  0x2e   :  { %339 = vperm.xlu0 %497, %v333_v13  }
  0x30   :  { %210 = vperm.xlu1 %499, %v200_v14  }
  0x32   :  { %349 = vperm.xlu0 %497, %v335_v15  }
  0x34   :  { %220 = vperm.xlu1 %499, %v202_v16  }
  0x36   :  { %386 = vperm.xlu0 %497, %v383_v17  }
  0x38   :  { %344 = vperm.xlu1 %499, %v334_v18  }
  0x3c   :  { %354 = vperm.xlu1 %499, %v336_v19  }
  0x90   :  { %v106_v29 = vpop.permute.xlu1 %105  ;;  %v114_v31 = vpop.permute.xlu0 %113 }
  0x91   :  { %v139_v58 = vmul.f32 %v134_v48, %v106_v29  ;;  %v140_v59 = vmul.f32 %v138_v49, %v106_v29  ;;  %v143_v6 = vmul.f32 %v134_v48, %v114_v31  ;;  %v144_v9 = vmul.f32 %v138_v49, %v114_v31 }
  0x94   :  { %v110_v38 = vpop.permute.xlu1 %109 }
  0x95   :  { %v60_v39 = vpop.permute.xlu0 %59  ;;  %v141_v54 = vmul.f32 %v134_v48, %v110_v38  ;;  %v142_v55 = vmul.f32 %v138_v49, %v110_v38 }
  0x96   :  { %v96_v52 = vmul.f32 %v91_v44, %v60_v39  ;;  %v97_v56 = vmul.f32 %v95_v47, %v60_v39 }
  0x98   :  { %v147_v63 = vadd.f32 %v139_v58, %v96_v52  ;;  %v148_v3 = vadd.f32 %v140_v59, %v97_v56 }
  0x99   :  { %v65_v45 = vpop.permute.xlu0 %64  ;;  %v75_v46 = vpop.permute.xlu1 %74 }
  0x9a   :  { %v98_v50 = vmul.f32 %v91_v44, %v65_v45  ;;  %v99_v51 = vmul.f32 %v95_v47, %v65_v45  ;;  %v102_v15 = vmul.f32 %v91_v44, %v75_v46  ;;  %v103_v16 = vmul.f32 %v95_v47, %v75_v46 }
  0x9c   :  { %v149_v60 = vadd.f32 %v141_v54, %v98_v50  ;;  %v150_v61 = vadd.f32 %v142_v55, %v99_v51 }
  0x9d   :  { %v70_v53 = vpop.permute.xlu0 %69 }
  0x9e   :  { %v118_v57 = vpop.permute.xlu1 %117  ;;  %v100_v0 = vmul.f32 %v91_v44, %v70_v53  ;;  %v101_v4 = vmul.f32 %v95_v47, %v70_v53  ;;  %v198_v44 = vld [vmem:[%s737_s4 + $0x18] sm:$0xff]  ;;  %s37_s4 = sld [smem:[#allocation3]] }
  0x9f   :  { %v145_v10 = vmul.f32 %v134_v48, %v118_v57  ;;  %v146_v11 = vmul.f32 %v138_v49, %v118_v57 }
  0xa0   :  { %v151_v12 = vadd.f32 %v143_v6, %v100_v0  ;;  %v152_v14 = vadd.f32 %v144_v9, %v101_v4 }
  0xa1   :  { %v167_v62 = vpop.permute.xlu0 %166  ;;  %v153_v19 = vadd.f32 %v145_v10, %v102_v15  ;;  %v154_v21 = vadd.f32 %v146_v11, %v103_v16 }
  0xa2   :  { %v181_v1 = vadd.f32 %v167_v62, %v149_v60  ;;  %v182_v2 = vadd.f32 %v167_v62, %v150_v61 }
  0xa3   :  { %v162_v5 = vpop.permute.xlu1 %161 }
  0xa4   :  { %500 = vtanh.f32 %v181_v1  ;;  %v179_v7 = vadd.f32 %v162_v5, %v147_v63  ;;  %v180_v8 = vadd.f32 %v162_v5, %v148_v3 }
  0xa5   :  { %502 = vtanh.f32 %v182_v2  ;;  %v206_v45 = vpop.permute.xlu0 %205 }
  0xa6   :  { %504 = vtanh.f32 %v179_v7 }
  0xa7   :  { %506 = vtanh.f32 %v180_v8  ;;  %v172_v13 = vpop.permute.xlu1 %171 }
  0xa8   :  { %v183_v17 = vadd.f32 %v172_v13, %v151_v12  ;;  %v184_v18 = vadd.f32 %v172_v13, %v152_v14 }
  0xa9   :  { %v216_v47 = vpop.permute.xlu0 %215 }
  0xaa   :  { %508 = vtanh.f32 %v183_v17 }
  0xab   :  { %v177_v24 = vpop.permute.xlu1 %176  ;;  %510 = vtanh.f32 %v184_v18 }
  0xac   :  { %v185_v25 = vadd.f32 %v177_v24, %v153_v19  ;;  %v186_v26 = vadd.f32 %v177_v24, %v154_v21 }
  0xad   :  { %v340_v1 = vpop.permute.xlu0 %339 }
  0xae   :  { %v501_v28 = vpop.eup %500  ;;  %512 = vtanh.f32 %v185_v25 }
  0xaf   :  { %v503_v29 = vpop.eup %502  ;;  %514 = vtanh.f32 %v186_v26  ;;  %v211_v46 = vpop.permute.xlu1 %210 }
  0xb0   :  { %v505_v30 = vpop.eup %504 }
  0xb1   :  { %v507_v31 = vpop.eup %506  ;;  %v477_v33 = vpack.c.bf16 %v501_v28, %v505_v30  ;;  %v350_v11 = vpop.permute.xlu0 %349 }
  0xb2   :  { %v475_v34 = vpack.c.bf16 %v503_v29, %v507_v31  ;;  %v395_v31 = vstv %s37_s4 }
  0xb3   :  { %v221_v55 = vpop.permute.xlu1 %220 }
  0xb4   :  { %476 = vmatprep.subr.bf16.mxu0 %v475_v34  ;;  %483 = vmatprep.subr.bf16.mxu1 %v475_v34  ;;  %v509_v35 = vpop.eup %508  ;;  %v397_v34 = vstv %s462_s27 }
  0xb5   :  { %478 = vmatpush1.bf16.msra.mxu0 %v477_v33  ;;  %485 = vmatpush1.bf16.msra.mxu1 %v477_v33  ;;  %v511_v36 = vpop.eup %510  ;;  %v400_v33 = vstv %s461_s26 }
  0xb7   :  { %v345_v4 = vpop.permute.xlu1 %344 }
  0xb8   :  { %v513_v37 = vpop.eup %512 }
  0xb9   :  { %v515_v38 = vpop.eup %514  ;;  %v481_v39 = vpack.c.bf16 %v513_v37, %v509_v35  ;;  %v396_v37 = vsub.f32 %v681_v23, %v395_v31 }
  0xba   :  { %v479_v40 = vpack.c.bf16 %v515_v38, %v511_v36  ;;  %v401_v38 = vsub.f32 %v681_v23, %v400_v33 }
  0xbb   :  { %v355_v17 = vpop.permute.xlu1 %354 }
  0xbc   :  { %480 = vmatprep.subr.bf16.mxu0 %v479_v40  ;;  %484 = vmatprep.subr.bf16.mxu1 %v479_v40 }
  0xbd   :  { %482 = vmatpush1.bf16.msra.mxu0 %v481_v39  ;;  %486 = vmatpush1.bf16.msra.mxu1 %v481_v39 }
  0xc0   :  { %468 = vmatmul.mubr.msk.f32.vlgmr.msra.gmra.mrb[0].mxu0 %vm223_vm0, %v195_v41  ;;  %470 = vmatmul.mubr.msk.f32.vlgmr.msra.gmra.mrb[0].mxu1 %vm223_vm0, %v197_v42  ;;  %v398_v41 = vsub.f32 %v681_v23, %v397_v34  ;;  %v407_v42 = vstv %s463_s28 }
  0xc1   :  { %306 = vmatprep.mubr.f32.mxu0 %v573_v20  ;;  %318 = vmatprep.mubr.f32.mxu1 %v573_v20 }
  0xc4   :  { %469 = vmatmul.mubr.msk.f32.gmra.mrb[2].mxu0 %vm223_vm0, %v196_v43  ;;  %471 = vmatmul.mubr.msk.f32.gmra.mrb[2].mxu1 %vm223_vm0, %v198_v44  ;;  %v387_v43 = vpop.permute.xlu0 %386 }
 0x193   :  { %v302_v48 = vpop.f32.mrb[0].mxu0  ;;  %v314_v49 = vpop.f32.mrb[0].mxu1 }
 0x194   :  { %v303_v50 = vadd.f32 %v302_v48, %v206_v45  ;;  %v315_v51 = vadd.f32 %v314_v49, %v216_v47  ;;  %v304_v52 = vpop.f32.mrb[1].mxu0  ;;  %v316_v53 = vpop.f32.mrb[1].mxu1  ;;  %v408_v48 = vsub.f32 %v681_v23, %v407_v42 }
 0x195   :  { %v305_v20 = vadd.f32 %v304_v52, %v206_v45  ;;  %v317_v54 = vadd.f32 %v316_v53, %v216_v47  ;;  %v472_v52 = vrot.slane %v401_v38, 9  ;;  %v392_v53 = vrot.slane %v387_v43, %v689_v32 }
 0x196   :  { %516 = vtanh.f32 %v303_v50 }
 0x197   :  { %518 = vtanh.f32 %v315_v51  ;;  %v308_v56 = vpop.f32.mrb[2].mxu0  ;;  %v320_v57 = vpop.f32.mrb[2].mxu1  ;;  %v399_v51 = vmul.f32 %v398_v41, %v396_v37 }
 0x198   :  { %520 = vtanh.f32 %v305_v20  ;;  %v309_v58 = vadd.f32 %v308_v56, %v211_v46  ;;  %v321_v59 = vadd.f32 %v320_v57, %v221_v55  ;;  %v310_v60 = vpop.f32.mrb[3].mxu0  ;;  %v322_v61 = vpop.f32.mrb[3].mxu1  ;;  %v473_v57 = vrot.slane %v408_v48, 9 }
 0x199   :  { %522 = vtanh.f32 %v317_v54  ;;  %v311_v62 = vadd.f32 %v310_v60, %v211_v46  ;;  %v323_v63 = vadd.f32 %v322_v61, %v221_v55  ;;  %v574_v46 = vmov 1983009808  }
 0x19a   :  { %524 = vtanh.f32 %v309_v58  ;;  %v424_v47 = vunpack.c.l.s4 %v574_v46  ;;  %v414_v55 = vmul.f32 %v681_v23, %v681_v23  ;;  %v406_v60 = vmul.f32 %v472_v52, %v399_v51 }
 0x19b   :  { %526 = vtanh.f32 %v321_v59  ;;  %v575_v61 = vmov 1966171168  }
 0x19c   :  { %528 = vtanh.f32 %v311_v62  ;;  %v425_v56 = vunpack.c.0.s8 %v424_v47  ;;  %v435_v62 = vunpack.c.l.s4 %v575_v61 }
 0x19d   :  { %530 = vtanh.f32 %v323_v63 }
 0x1a0   :  { %v517_v0 = vpop.eup %516 }
 0x1a1   :  { %v519_v2 = vpop.eup %518  ;;  %v357_v8 = vmul.f32 %v517_v0, %v340_v1  ;;  %v474_v0 = vrot.slane %v414_v55, 9 }
 0x1a2   :  { %v521_v3 = vpop.eup %520  ;;  %v361_v12 = vmul.f32 %v519_v2, %v350_v11  ;;  %v413_v2 = vmul.f32 %v473_v57, %v406_v60 }
 0x1a3   :  { %v523_v5 = vpop.eup %522  ;;  %v358_v13 = vmul.f32 %v521_v3, %v340_v1  ;;  %v428_v1 = vsub.s32 %v425_v56, %v685_v27  ;;  %v419_v32 = vadd.f32 %v474_v0, %v414_v55 }
 0x1a4   :  { %v525_v6 = vpop.eup %524  ;;  %v362_v18 = vmul.f32 %v523_v5, %v350_v11 }
 0x1a5   :  { %v527_v7 = vpop.eup %526  ;;  %v359_v9 = vmul.f32 %v525_v6, %v345_v4 }
 0x1a6   :  { %v529_v10 = vpop.eup %528  ;;  %v363_v19 = vmul.f32 %v527_v7, %v355_v17 }
 0x1a7   :  { %v365_v14 = vadd.f32 %v359_v9, %v357_v8  ;;  %v360_v15 = vmul.f32 %v529_v10, %v345_v4  ;;  %v531_v16 = vpop.eup %530  ;;  %v436_v4 = vunpack.c.0.s8 %v435_v62 }
 0x1a8   :  { %v364_v26 = vmul.f32 %v531_v16, %v355_v17 }
 0x1a9   :  { %v366_v21 = vadd.f32 %v365_v14, %v361_v12  ;;  %v374_v24 = vadd.f32 %v360_v15, %v358_v13  ;;  %v439_v7 = vsub.s32 %v436_v4, %v685_v27 }
 0x1ab   :  { %v367_v25 = vadd.f32 %v366_v21, %v363_v19  ;;  %v375_v28 = vadd.f32 %v374_v24, %v362_v18 }
 0x1ad   :  { %v368_v29 = vrot.slane %v367_v25, 4  ;;  %v376_v30 = vadd.f32 %v375_v28, %v364_v26 }
 0x1af   :  { %v369_v35 = vadd.f32 %v368_v29, %v367_v25  ;;  %v377_v36 = vrot.slane %v376_v30, 4 }
 0x1b1   :  { %v370_v39 = vrot.slane %v369_v35, 2  ;;  %v378_v40 = vadd.f32 %v377_v36, %v376_v30 }
 0x1b3   :  { %v379_v44 = vrot.slane %v378_v40, 2  ;;  %v371_v45 = vadd.f32 %v370_v39, %v369_v35 }
 0x1b5   :  { %v372_v49 = vrot.slane %v371_v45, 1  ;;  %v380_v50 = vadd.f32 %v379_v44, %v378_v40 }
 0x1b7   :  { %v373_v20 = vadd.f32 %v372_v49, %v371_v45  ;;  %v381_v54 = vrot.slane %v380_v50, 1 }
 0x1b9   :  { %v382_v58 = vadd.f32 %v381_v54, %v380_v50  ;;  %v393_v59 = vadd.f32 %v392_v53, %v373_v20 }
 0x1bb   :  { %v394_v63 = vadd.f32 %v392_v53, %v382_v58 }
 0x1bd   :  { %v422_v3 = vcombine.low %v393_v59, %v394_v63 }
 0x1bf   :  { %v429_v5 = vrot.slane %v422_v3, %v428_v1 }
 0x1c1   :  { %v431_v6 = vmul.f32 %v429_v5, %v413_v2 }
 0x1c3   :  { %v432_v23 = vadd.f32 %v431_v6, %v419_v32 }
 0x1c5   :  { %v440_v8 = vrot.slane %v432_v23, %v439_v7 }
 0x1c7   :  { %446 = vst.msk [vmem:[#allocation5] sm:$0x3] %vm444_vm1, %v440_v8 }
 0x1c8   :  { %555 = shalt.err (!%p552_p9)
}
 0x1c9   :  { %s556_s12 = scalar_lea.hbm %s740_s8, 32 }
 0x1ca   :  { %p557_p10 = scmp.ne.s32.totalorder %s740_s8, %s556_s12  ;;  %p560_p11 = scmp.lt.u32.totalorder %s556_s12, %s740_s8 }
 0x1cc   :  { %p562_p12 = pnand %p560_p11, %p557_p10 }
 0x1ce   :  { %565 = shalt.err (!%p562_p12)
}
 0x1cf   :  { %456 = dma.vmem_to_hbm [thread:$0]  %s454_s30, 32, %s740_s8, [#allocation6]  }
 0x1d0   :  { %568 = dma.done.wait [#allocation6], 32  }
 0x1d1   :  { %569 = vsyncadd [#allocation6], 4294967264 }
 0x1d2   :  { %460 = vsyncpa [#allocation6], 1 }

</bundles_post_ra>
